<compile_context>
chip_gen: v7x
topology: tpu7x:2x2x1
jax: 0.10.0
libtpu: 0.0.40
codegen_flags: <defaults>
</compile_context>

<pallas_src>
import math

import jax
import jax.numpy as jnp
from jax.experimental import pallas as pl
from jax.experimental.pallas import tpu as pltpu


def _round_up(n, m):
    return ((n + m - 1) // m) * m


def mlp_block_kernel(params_ref, x_ref, o_ref):
    # params_ref: (8, P) packed rows:
    #   row 0: w1   (Cin lanes, rest zero)
    #   row 1: w1_2 (Cin lanes, rest zero)
    #   row 2: w2   as a row (Cout lanes, rest zero)
    #   row 3: w2_2 as a row (Cout lanes, rest zero)
    #   row 4: bias (Cout lanes, rest zero)
    #   rows 5..7: zero padding
    # x_ref: (B, Cin)   o_ref: (B, Cout)     (Cin/Cout already lane-padded)
    cin = x_ref.shape[1]
    cout = o_ref.shape[1]

    x = x_ref[...]
    w1 = params_ref[0:1, :cin]
    w1b = params_ref[1:2, :cin]
    w2r = params_ref[2:3, :cout]
    w2br = params_ref[3:4, :cout]
    b = params_ref[4:5, :cout]

    # Rank-1 contractions: (B, Cin) * (1, Cin) --sum over lanes--> (B, 1).
    # Kept on VPU/XLU on purpose: effective K/N of 2 would leave the MXU <1%
    # utilized and only add result-FIFO drain latency in a mem-bound kernel.
    s1 = jnp.sum(x * w1, axis=-1, keepdims=True)
    s2 = jnp.sum(x * w1b, axis=-1, keepdims=True)

    # Outer products via broadcast multiply (VPU), + bias, + ReLU.
    y = jnp.maximum(s1 * w2r + s2 * w2br + b, 0.0)

    # BatchNorm1d (training mode, non-affine), eps=1e-5, biased variance.
    # Centered two-pass variance: y is register/VMEM-resident, so the second
    # pass is free and avoids E[y^2]-mean^2 cancellation.
    inv_b = 1.0 / y.shape[0]
    mean = jnp.sum(y, axis=0, keepdims=True) * inv_b
    d = y - mean
    var = jnp.sum(d * d, axis=0, keepdims=True) * inv_b
    o_ref[...] = (d * jax.lax.rsqrt(var + 1e-5)).astype(o_ref.dtype)


def mlp_block_forward(x, w1, w2, w1_2, w2_2, bias):
    """x: (B, inplane) f32. Returns (B, outplane) f32.

    Rank-1 factors (never materialized into W):
      w1, w1_2 : (1, inplane)
      w2, w2_2 : (outplane, 1)
      bias     : (outplane,)
    """
    B, cin = x.shape
    cout = w2.shape[0]

    cin_p = _round_up(cin, 128)
    cout_p = _round_up(cout, 128)
    P = max(cin_p, cout_p)

    # Lane-pad the feature axis of x if needed (zero pad; padded lanes hit
    # zero weights so the contraction is unchanged).  No-op at demo shapes.
    if cin_p != cin:
        x = jnp.pad(x, ((0, 0), (0, cin_p - cin)))

    # Pack the five parameter rows into one (8, P) tile -> single input DMA.
    params = jnp.zeros((8, P), jnp.float32)
    params = params.at[0, :cin].set(w1[0])
    params = params.at[1, :cin].set(w1_2[0])
    params = params.at[2, :cout].set(w2[:, 0])
    params = params.at[3, :cout].set(w2_2[:, 0])
    params = params.at[4, :cout].set(bias)

    # Rough cost hint: 2 lane reductions over Cin + 2 outer products + bias /
    # ReLU / BN elementwise; one rsqrt per feature.
    flops = 4 * B * cin_p + 12 * B * cout_p
    bytes_accessed = 4 * (B * cin_p + 8 * P + B * cout_p)
    ce = pl.CostEstimate(flops=flops, transcendentals=cout_p,
                         bytes_accessed=bytes_accessed)

    vmem = pl.BlockSpec(memory_space=pltpu.MemorySpace.VMEM)
    out = pl.pallas_call(
        mlp_block_kernel,
        out_shape=jax.ShapeDtypeStruct((B, cout_p), jnp.float32),
        in_specs=[vmem, vmem],
        out_specs=vmem,
        cost_estimate=ce,
    )(params, x)

    if cout_p != cout:
        out = out[:, :cout]
    return out


def xavier_uniform(key, shape):
    # torch.nn.init.xavier_uniform_ with gain=1.0 on a 2-D tensor (fan_out, fan_in)
    fan_out, fan_in = shape
    bound = math.sqrt(6.0 / (fan_in + fan_out))
    return jax.random.uniform(key, shape, jnp.float32, minval=-bound, maxval=bound)


if __name__ == "__main__":
    # Lane-dense toy shapes: 128 features fill the 128-lane vreg axis exactly,
    # batch of 8 fills the sublane axis.
    inplane, outplane = 128, 128
    batch = 8

    key = jax.random.PRNGKey(0)
    k_x, k_w1, k_w2, k_w1_2, k_w2_2 = jax.random.split(key, 5)

    x = jax.random.normal(k_x, (batch, inplane), jnp.float32)

    # Deterministic parameter init matching the module's parameter shapes.
    w1 = xavier_uniform(k_w1, (1, inplane))          # linear_w1
    w2 = xavier_uniform(k_w2, (outplane, 1))         # linear_w2
    w1_2 = xavier_uniform(k_w1_2, (1, inplane))      # linear_w1_2
    w2_2 = xavier_uniform(k_w2_2, (outplane, 1))     # linear_w2_2
    bias = jnp.full((outplane,), 0.1, jnp.float32)   # linear_bias.fill_(0.1)

    out = mlp_block_forward(x, w1, w2, w1_2, w2_2, bias)
    out = jax.block_until_ready(out)

    # Cross-check against a pure-JAX reference of the original
    # (materialized-W) math.
    W = w2 @ w1 + w2_2 @ w1_2
    y_ref = jnp.maximum(x @ W.T + bias, 0.0)
    m = y_ref.mean(axis=0, keepdims=True)
    v = ((y_ref - m) ** 2).mean(axis=0, keepdims=True)
    ref = (y_ref - m) / jnp.sqrt(v + 1e-5)
    assert out.shape == ref.shape
    assert jnp.allclose(out, ref, atol=1e-4, rtol=1e-4), "mismatch vs reference"

    print("KERNEL_OK")
</pallas_src>

<mosaic_0001>
module attributes {stable_mosaic.version = 11 : i64} {
  func.func @mlp_block_kernel(%arg0: memref<8x128xf32, #tpu.memory_space<vmem>>, %arg1: memref<8x128xf32, #tpu.memory_space<vmem>>, %arg2: memref<8x128xf32, #tpu.memory_space<vmem>>) attributes {dimension_semantics = [], scalar_prefetch = 0 : i64, scratch_operands = 0 : i64, tpu.core_type = #tpu.core_type<tc>} {
    %c0 = arith.constant 0 : index
    %c0_0 = arith.constant 0 : index
    %0 = vector.load %arg1[%c0, %c0_0] : memref<8x128xf32, #tpu.memory_space<vmem>>, vector<8x128xf32>
    %c0_1 = arith.constant 0 : index
    %c0_2 = arith.constant 0 : index
    %1 = vector.load %arg0[%c0_1, %c0_2] : memref<8x128xf32, #tpu.memory_space<vmem>>, vector<1x128xf32>
    %c1 = arith.constant 1 : index
    %c0_3 = arith.constant 0 : index
    %2 = vector.load %arg0[%c1, %c0_3] : memref<8x128xf32, #tpu.memory_space<vmem>>, vector<1x128xf32>
    %c2 = arith.constant 2 : index
    %c0_4 = arith.constant 0 : index
    %3 = vector.load %arg0[%c2, %c0_4] : memref<8x128xf32, #tpu.memory_space<vmem>>, vector<1x128xf32>
    %c3 = arith.constant 3 : index
    %c0_5 = arith.constant 0 : index
    %4 = vector.load %arg0[%c3, %c0_5] : memref<8x128xf32, #tpu.memory_space<vmem>>, vector<1x128xf32>
    %c4 = arith.constant 4 : index
    %c0_6 = arith.constant 0 : index
    %5 = vector.load %arg0[%c4, %c0_6] : memref<8x128xf32, #tpu.memory_space<vmem>>, vector<1x128xf32>
    %6 = vector.broadcast %1 : vector<1x128xf32> to vector<8x128xf32>
    %7 = arith.mulf %0, %6 : vector<8x128xf32>
    %cst = arith.constant dense<0.000000e+00> : vector<8xf32>
    %8 = vector.multi_reduction <add>, %7, %cst [1] : vector<8x128xf32> to vector<8xf32>
    %9 = vector.shape_cast %8 : vector<8xf32> to vector<8x1xf32>
    %10 = vector.broadcast %2 : vector<1x128xf32> to vector<8x128xf32>
    %11 = arith.mulf %0, %10 : vector<8x128xf32>
    %cst_7 = arith.constant dense<0.000000e+00> : vector<8xf32>
    %12 = vector.multi_reduction <add>, %11, %cst_7 [1] : vector<8x128xf32> to vector<8xf32>
    %13 = vector.shape_cast %12 : vector<8xf32> to vector<8x1xf32>
    %14 = vector.broadcast %9 : vector<8x1xf32> to vector<8x128xf32>
    %15 = vector.broadcast %3 : vector<1x128xf32> to vector<8x128xf32>
    %16 = arith.mulf %14, %15 : vector<8x128xf32>
    %17 = vector.broadcast %13 : vector<8x1xf32> to vector<8x128xf32>
    %18 = vector.broadcast %4 : vector<1x128xf32> to vector<8x128xf32>
    %19 = arith.mulf %17, %18 : vector<8x128xf32>
    %20 = arith.addf %16, %19 : vector<8x128xf32>
    %21 = vector.broadcast %5 : vector<1x128xf32> to vector<8x128xf32>
    %22 = arith.addf %20, %21 : vector<8x128xf32>
    %cst_8 = arith.constant 0.000000e+00 : f32
    %23 = vector.broadcast %cst_8 : f32 to vector<8x128xf32>
    %24 = arith.maximumf %22, %23 : vector<8x128xf32>
    %cst_9 = arith.constant dense<0.000000e+00> : vector<128xf32>
    %25 = vector.multi_reduction <add>, %24, %cst_9 [0] : vector<8x128xf32> to vector<128xf32>
    %26 = vector.shape_cast %25 : vector<128xf32> to vector<1x128xf32>
    %cst_10 = arith.constant 1.250000e-01 : f32
    %27 = vector.broadcast %cst_10 : f32 to vector<1x128xf32>
    %28 = arith.mulf %26, %27 : vector<1x128xf32>
    %29 = vector.broadcast %28 : vector<1x128xf32> to vector<8x128xf32>
    %30 = arith.subf %24, %29 : vector<8x128xf32>
    %31 = arith.mulf %30, %30 : vector<8x128xf32>
    %cst_11 = arith.constant dense<0.000000e+00> : vector<128xf32>
    %32 = vector.multi_reduction <add>, %31, %cst_11 [0] : vector<8x128xf32> to vector<128xf32>
    %33 = vector.shape_cast %32 : vector<128xf32> to vector<1x128xf32>
    %cst_12 = arith.constant 1.250000e-01 : f32
    %34 = vector.broadcast %cst_12 : f32 to vector<1x128xf32>
    %35 = arith.mulf %33, %34 : vector<1x128xf32>
    %cst_13 = arith.constant 9.99999974E-6 : f32
    %36 = vector.broadcast %cst_13 : f32 to vector<1x128xf32>
    %37 = arith.addf %35, %36 : vector<1x128xf32>
    %38 = math.rsqrt %37 : vector<1x128xf32>
    %39 = vector.broadcast %38 : vector<1x128xf32> to vector<8x128xf32>
    %40 = arith.mulf %30, %39 : vector<8x128xf32>
    %c0_14 = arith.constant 0 : index
    %c0_15 = arith.constant 0 : index
    %41 = vector.load %arg2[%c0_14, %c0_15] : memref<8x128xf32, #tpu.memory_space<vmem>>, vector<8x128xf32>
    tpu.vector_store %arg2[%c0_14, %c0_15], %40 {strides = array<i32>} : memref<8x128xf32, #tpu.memory_space<vmem>>, vector<8x128xf32>,
    return
  }
}

</mosaic_0001>

<bundles_post_ra>
// kernel: tpu_custom_call.1
= control target key start
LH: loop header
LB: loop body
LE: loop exit
PB: predicated region body
PF: predicated region fallthrough
CT: control target
= control target key end

     0   :  { %7 = vsyncpa [#allocation3], 0  ;;  %s245_s0 = inlined_call_operand.hbm [shape: f32[8,128], index: 0, kind: input, shape index: {}]   ;;  %s246_s1 = inlined_call_operand.hbm [shape: f32[8,128], index: 1, kind: input, shape index: {}]   ;;  %s247_s2 = inlined_call_operand.hbm [shape: f32[8,128], index: 2, kind: output, shape index: {}]  }
   0x1   :  { %8 = vsyncpa [#allocation6], 0 }
   0x2   :  { %9 = vsyncpa [#allocation4], 0  ;;  %s191_s9 = smov [#allocation2]   ;;  %s192_s11 = smov [#allocation5]  }
   0x3   :  { %s16_s10 = sshll.u32 %s191_s9, 4  ;;  %s26_s12 = sshll.u32 %s192_s11, 4  ;;  %s17_s10 = int_to_ptr.vmem [resolvable:$true] %s16_s10  ;;  %s27_s12 = int_to_ptr.vmem [resolvable:$true] %s26_s12 }
   0x4   :  { %s119_s15 = scalar_lea.hbm %s245_s0, 128 }
   0x5   :  { %p120_p0 = scmp.ne.s32.totalorder %s245_s0, %s119_s15  ;;  %p123_p1 = scmp.lt.u32.totalorder %s119_s15, %s245_s0 }
   0x7   :  { %p125_p2 = pnand %p123_p1, %p120_p0 }
   0x9   :  { %128 = shalt.err (!%p125_p2)
}
   0xa   :  { %s129_s20 = scalar_lea.vmem %s17_s10, 128  ;;  %p134_p4 = scmp.lt.s32.totalorder %s17_s10, %s17_s10 }
   0xb   :  { %p130_p3 = scmp.ne.s32.totalorder %s17_s10, %s129_s20  ;;  %p135_p5 = scmp.lt.s32.totalorder %s129_s20, %s129_s20 }
   0xd   :  { %p136_p6 = por %p135_p5, %p134_p4 }
   0xf   :  { %p137_p7 = pnand %p136_p6, %p130_p3 }
  0x11   :  { %140 = shalt.err (!%p137_p7)
}
  0x12   :  { %19 = dma.hbm_to_vmem [thread:$0]  %s245_s0, 128, %s17_s10, [#allocation3]  }
  0x13   :  { %s141_s25 = scalar_lea.hbm %s246_s1, 128 }
  0x14   :  { %p142_p8 = scmp.ne.s32.totalorder %s246_s1, %s141_s25  ;;  %p145_p9 = scmp.lt.u32.totalorder %s141_s25, %s246_s1 }
  0x16   :  { %p147_p10 = pnand %p145_p9, %p142_p8 }
  0x18   :  { %150 = shalt.err (!%p147_p10)
}
  0x19   :  { %s151_s30 = scalar_lea.vmem %s27_s12, 128  ;;  %p156_p12 = scmp.lt.s32.totalorder %s27_s12, %s27_s12 }
  0x1a   :  { %p152_p11 = scmp.ne.s32.totalorder %s27_s12, %s151_s30  ;;  %p157_p13 = scmp.lt.s32.totalorder %s151_s30, %s151_s30 }
  0x1c   :  { %p158_p0 = por %p157_p13, %p156_p12 }
  0x1e   :  { %p159_p1 = pnand %p158_p0, %p152_p11 }
  0x20   :  { %162 = shalt.err (!%p159_p1)
}
  0x21   :  { %29 = dma.hbm_to_vmem [thread:$0]  %s246_s1, 128, %s27_s12, [#allocation6]  }
  0x22   :  { %185 = dma.done.wait [#allocation3], 128  }
  0x23   :  { %186 = vsyncadd [#allocation3], 4294967168 }
  0x24   :  { %187 = dma.done.wait [#allocation6], 128  }
  0x25   :  { %188 = vsyncadd [#allocation6], 4294967168  ;;  %v36_v0 = vld [vmem:[#allocation5] sm:$0xff]  ;;  %v109_v1 = vld [vmem:[#allocation2] ss:$0 sm:$0xff]  ;;  %s193_s1 = smov [#allocation7]  }
  0x26   :  { %v110_v2 = vld [vmem:[#allocation2 + $0x1] ss:$0 sm:$0xff]  ;;  %v46_v3 = vmul.f32 %v109_v1, %v36_v0  ;;  %v111_v6 = vld [vmem:[#allocation2 + $0x2] ss:$0 sm:$0xff]  ;;  %v112_v7 = vld [vmem:[#allocation2 + $0x3] ss:$0 sm:$0xff] }
  0x27   :  { %v53_v4 = vmul.f32 %v110_v2, %v36_v0  ;;  %v113_v11 = vld [vmem:[#allocation2 + $0x4] ss:$0 sm:$0xff]  ;;  %s99_s4 = sshll.u32 %s193_s1, 4  ;;  %s100_s4 = int_to_ptr.vmem [resolvable:$true] %s99_s4 }
  0x28   :  { %47 = vadd.xlane.f32.xlu0 %v46_v3  ;;  %s163_s5 = scalar_lea.vmem %s100_s4, 128  ;;  %p168_p3 = scmp.lt.s32.totalorder %s100_s4, %s100_s4 }
  0x29   :  { %p164_p2 = scmp.ne.s32.totalorder %s100_s4, %s163_s5  ;;  %p169_p4 = scmp.lt.s32.totalorder %s163_s5, %s163_s5 }
  0x2b   :  { %p170_p5 = por %p169_p4, %p168_p3 }
  0x2c   :  { %54 = vadd.xlane.f32.xlu0 %v53_v4 }
  0x2d   :  { %p171_p6 = pnand %p170_p5, %p164_p2 }
  0xb5   :  { %v48_v5 = vpop.xlane.xlu0 %47 }
  0xb6   :  { %v60_v9 = vmul.f32 %v111_v6, %v48_v5 }
  0xb9   :  { %v55_v8 = vpop.xlane.xlu0 %54 }
  0xba   :  { %v65_v10 = vmul.f32 %v112_v7, %v55_v8 }
  0xbc   :  { %v66_v12 = vadd.f32 %v65_v10, %v60_v9 }
  0xbe   :  { %v71_v13 = vadd.f32 %v113_v11, %v66_v12 }
  0xc0   :  { %v72_v14 = vmax.f32 %v71_v13, 0.0 }
  0xc2   :  { %v73_v15 = vrot.slane %v72_v14, 4 }
  0xc4   :  { %v74_v16 = vadd.f32 %v73_v15, %v72_v14 }
  0xc6   :  { %v75_v17 = vrot.slane %v74_v16, 2 }
  0xc8   :  { %v76_v18 = vadd.f32 %v75_v17, %v74_v16 }
  0xca   :  { %v77_v19 = vrot.slane %v76_v18, 1 }
  0xcc   :  { %v78_v20 = vadd.f32 %v77_v19, %v76_v18 }
  0xce   :  { %v79_v21 = vmul.f32 0.125, %v78_v20 }
  0xd0   :  { %v80_v22 = vsub.f32 %v72_v14, %v79_v21 }
  0xd2   :  { %v81_v23 = vmul.f32 %v80_v22, %v80_v22 }
  0xd4   :  { %v82_v24 = vrot.slane %v81_v23, 4 }
  0xd6   :  { %v83_v25 = vadd.f32 %v82_v24, %v81_v23 }
  0xd8   :  { %v84_v26 = vrot.slane %v83_v25, 2 }
  0xda   :  { %v85_v27 = vadd.f32 %v84_v26, %v83_v25 }
  0xdc   :  { %v86_v28 = vrot.slane %v85_v27, 1 }
  0xde   :  { %v87_v29 = vadd.f32 %v86_v28, %v85_v27 }
  0xe0   :  { %v88_v30 = vmul.f32 0.125, %v87_v29 }
  0xe2   :  { %v89_v31 = vadd.f32 1e-05, %v88_v30 }
  0xe4   :  { %117 = vrsqrt.f32 %v89_v31 }
  0xee   :  { %v118_v32 = vpop.eup %117 }
  0xef   :  { %v91_v33 = vmul.f32 %v118_v32, %v80_v22 }
  0xf1   :  { %92 = vst [vmem:[#allocation7] sm:$0xff] %v91_v33 }
  0xf2   :  { %174 = shalt.err (!%p171_p6)
}
  0xf3   :  { %s175_s8 = scalar_lea.hbm %s247_s2, 128 }
  0xf4   :  { %p176_p7 = scmp.ne.s32.totalorder %s247_s2, %s175_s8  ;;  %p179_p8 = scmp.lt.u32.totalorder %s175_s8, %s247_s2 }
  0xf6   :  { %p181_p9 = pnand %p179_p8, %p176_p7 }
  0xf8   :  { %184 = shalt.err (!%p181_p9)
}
  0xf9   :  { %102 = dma.vmem_to_hbm [thread:$0]  %s100_s4, 128, %s247_s2, [#allocation4]  }
  0xfa   :  { %189 = dma.done.wait [#allocation4], 128  }
  0xfb   :  { %190 = vsyncadd [#allocation4], 4294967168 }
  0xfc   :  { %106 = vsyncpa [#allocation3], 1 }
  0xfd   :  { %107 = vsyncpa [#allocation6], 1 }
  0xfe   :  { %108 = vsyncpa [#allocation4], 1 }

</bundles_post_ra>
